<compile_context>
chip_gen: v7x
topology: tpu7x:2x2x1
jax: 0.10.0
libtpu: 0.0.40
codegen_flags: <defaults>
</compile_context>

<pallas_src>
import jax
import jax.numpy as jnp
from jax.experimental import pallas as pl
from jax.experimental.pallas import tpu as pltpu

FEAT = 100   # nn.Linear(100, 100)
PAD = 128    # lane-dense padded feature width


def _mlp_kernel(x_ref, w12_ref, w34_ref, o_ref):
    # fused inner model 0 (+ bias via augmented row) then ReLU
    h = jnp.maximum(
        jnp.dot(x_ref[...], w12_ref[...], preferred_element_type=jnp.float32),
        0.0,
    )
    # fused inner model 1 (+ bias) then ReLU
    o_ref[...] = jnp.maximum(
        jnp.dot(h, w34_ref[...], preferred_element_type=jnp.float32),
        0.0,
    ).astype(o_ref.dtype)


def _fuse_and_pad_weights(params):
    """Fuse each Linear->Linear pair and embed bias in an augmented, padded W."""
    (w1, b1), (w2, b2), (w3, b3), (w4, b4) = params

    w12 = w1 @ w2                 # (FEAT, FEAT)
    b12 = b1 @ w2 + b2            # (1, FEAT)
    w34 = w3 @ w4
    b34 = b3 @ w4 + b4

    def augment(w, b, carry_ones_col):
        wa = jnp.zeros((PAD, PAD), jnp.float32)
        wa = wa.at[:FEAT, :FEAT].set(w)
        wa = wa.at[FEAT, :FEAT].set(b[0])          # bias row (multiplied by ones col)
        if carry_ones_col:
            wa = wa.at[FEAT, FEAT].set(1.0)        # keep ones column alive for layer 2
        return wa

    return augment(w12, b12, True), augment(w34, b34, False)


def _pad_x(x):
    B = x.shape[0]
    xp = jnp.zeros((B, PAD), x.dtype)
    xp = xp.at[:, :FEAT].set(x)
    xp = xp.at[:, FEAT].set(1.0)                   # augmented ones column for the bias
    return xp


def toy_outer_model_forward(x, params):
    """params: list of 4 (W_t, b) tuples; W_t is (F_in, F_out), b is (1, F_out)."""
    B, F = x.shape
    assert F == FEAT

    w12a, w34a = _fuse_and_pad_weights(params)
    xp = _pad_x(x)

    vmem = pl.BlockSpec(memory_space=pltpu.MemorySpace.VMEM)

    out_pad = pl.pallas_call(
        _mlp_kernel,
        out_shape=jax.ShapeDtypeStruct((B, PAD), x.dtype),
        in_specs=[vmem, vmem, vmem],
        out_specs=vmem,
    )(xp, w12a, w34a)

    return out_pad[:, :FEAT]


def init_params(key):
    """Deterministic init mimicking PyTorch Linear default (uniform +-1/sqrt(fan_in))."""
    params = []
    bound = 1.0 / jnp.sqrt(jnp.float32(FEAT))
    for _ in range(4):
        kw, kb, key = jax.random.split(key, 3)
        # PyTorch stores W as (out, in); we store its transpose (in, out).
        w_t = jax.random.uniform(kw, (FEAT, FEAT), jnp.float32, -bound, bound)
        b = jax.random.uniform(kb, (1, FEAT), jnp.float32, -bound, bound)
        params.append((w_t, b))
    return params


def reference_forward(x, params):
    h = x
    for idx, (w, b) in enumerate(params):
        h = h @ w + b
        if idx in (1, 3):  # ReLU after each ToyInnerModel
            h = jnp.maximum(h, 0.0)
    return h


if __name__ == "__main__":
    key = jax.random.PRNGKey(0)
    kx, kp = jax.random.split(key)

    B = 8
    x = jax.random.normal(kx, (B, FEAT), jnp.float32)
    params = init_params(kp)

    fwd = jax.jit(toy_outer_model_forward)
    out = jax.block_until_ready(fwd(x, params))

    ref = reference_forward(x, params)
    assert out.shape == (B, FEAT)
    assert jnp.allclose(out, ref, atol=1e-4, rtol=1e-4), "mismatch vs reference"

    print("KERNEL_OK")
</pallas_src>

<mosaic_0001>
module attributes {stable_mosaic.version = 11 : i64} {
  func.func @_mlp_kernel(%arg0: memref<8x128xf32, #tpu.memory_space<vmem>>, %arg1: memref<128x128xf32, #tpu.memory_space<vmem>>, %arg2: memref<128x128xf32, #tpu.memory_space<vmem>>, %arg3: memref<8x128xf32, #tpu.memory_space<vmem>>) attributes {dimension_semantics = [], scalar_prefetch = 0 : i64, scratch_operands = 0 : i64, tpu.core_type = #tpu.core_type<tc>} {
    %c0 = arith.constant 0 : index
    %c0_0 = arith.constant 0 : index
    %0 = vector.load %arg0[%c0, %c0_0] : memref<8x128xf32, #tpu.memory_space<vmem>>, vector<8x128xf32>
    %c0_1 = arith.constant 0 : index
    %c0_2 = arith.constant 0 : index
    %1 = vector.load %arg1[%c0_1, %c0_2] : memref<128x128xf32, #tpu.memory_space<vmem>>, vector<128x128xf32>
    %cst = arith.constant dense<0.000000e+00> : vector<8x128xf32>
    %2 = tpu.matmul %0, %1, %cst {dimension_numbers = #tpu.dot_dimension_numbers<[1], [0], [0], [1], [0, 0, 1, 1], [], []>} : vector<8x128xf32>, vector<128x128xf32>, vector<8x128xf32> -> vector<8x128xf32>
    %cst_3 = arith.constant 0.000000e+00 : f32
    %3 = vector.broadcast %cst_3 : f32 to vector<8x128xf32>
    %4 = arith.maximumf %2, %3 : vector<8x128xf32>
    %c0_4 = arith.constant 0 : index
    %c0_5 = arith.constant 0 : index
    %5 = vector.load %arg2[%c0_4, %c0_5] : memref<128x128xf32, #tpu.memory_space<vmem>>, vector<128x128xf32>
    %cst_6 = arith.constant dense<0.000000e+00> : vector<8x128xf32>
    %6 = tpu.matmul %4, %5, %cst_6 {dimension_numbers = #tpu.dot_dimension_numbers<[1], [0], [0], [1], [0, 0, 1, 1], [], []>} : vector<8x128xf32>, vector<128x128xf32>, vector<8x128xf32> -> vector<8x128xf32>
    %cst_7 = arith.constant 0.000000e+00 : f32
    %7 = vector.broadcast %cst_7 : f32 to vector<8x128xf32>
    %8 = arith.maximumf %6, %7 : vector<8x128xf32>
    %c0_8 = arith.constant 0 : index
    %c0_9 = arith.constant 0 : index
    %9 = vector.load %arg3[%c0_8, %c0_9] : memref<8x128xf32, #tpu.memory_space<vmem>>, vector<8x128xf32>
    tpu.vector_store %arg3[%c0_8, %c0_9], %8 {strides = array<i32>} : memref<8x128xf32, #tpu.memory_space<vmem>>, vector<8x128xf32>,
    return
  }
}

</mosaic_0001>

<bundles_post_ra>
// kernel: toy_outer_model_forward.1
= control target key start
LH: loop header
LB: loop body
LE: loop exit
PB: predicated region body
PF: predicated region fallthrough
CT: control target
= control target key end

     0   :  { %v385_v3 = vmov 0.0|0.0   ;;  %vm386_vm0 = vmmov 0   ;;  %v387_v6 = vmov 0.0   ;;  %s536_s0 = inlined_call_operand.vmem [shape: f32[8,128], index: 0, kind: input, shape index: {}]   ;;  %s537_s1 = inlined_call_operand.vmem [shape: f32[128,128], index: 1, kind: input, shape index: {}]   ;;  %s538_s2 = inlined_call_operand.vmem [shape: f32[128,128], index: 2, kind: input, shape index: {}]   ;;  %s539_s3 = inlined_call_operand.hbm [shape: f32[8,128], index: 3, kind: output, shape index: {}]  }
   0x1   :  { %v16_v0 = vld [vmem:[%s537_s1] sm:$0xff]  ;;  %v17_v1 = vld [vmem:[%s537_s1 + $0x8] sm:$0xff]  ;;  %v18_v2 = vld [vmem:[%s537_s1 + $0x10] sm:$0xff]  ;;  %309 = vmatprep.subr.bf16.mxu0 %v385_v3  ;;  %271 = vmatprep.mubr.msk.f32.mxu0 %vm386_vm0, %v387_v6 }
   0x2   :  { %v310_v4 = vpack.c.bf16 %v17_v1, %v16_v0  ;;  %v19_v5 = vld [vmem:[%s537_s1 + $0x18] sm:$0xff]  ;;  %333 = vmatprep.subr.bf16.mxu1 %v385_v3  ;;  %306 = vmatprep.mubr.msk.f32.mxu1 %vm386_vm0, %v387_v6  ;;  %v20_v8 = vld [vmem:[%s537_s1 + $0x20] sm:$0xff]  ;;  %v21_v9 = vld [vmem:[%s537_s1 + $0x28] sm:$0xff] }
   0x3   :  { %v313_v7 = vpack.c.bf16 %v19_v5, %v18_v2  ;;  %v103_v10 = vld [vmem:[%s538_s2] sm:$0xff]  ;;  %v104_v11 = vld [vmem:[%s538_s2 + $0x8] sm:$0xff]  ;;  %v105_v12 = vld [vmem:[%s538_s2 + $0x10] sm:$0xff]  ;;  %v316_v14 = vpack.c.bf16 %v21_v9, %v20_v8 }
   0x4   :  { %311 = vmatpush3.bf16.msra.mxu0 %v310_v4  ;;  %v106_v13 = vld [vmem:[%s538_s2 + $0x18] sm:$0xff]  ;;  %v334_v15 = vpack.c.bf16 %v104_v11, %v103_v10  ;;  %v22_v16 = vld [vmem:[%s537_s1 + $0x30] sm:$0xff]  ;;  %v107_v19 = vld [vmem:[%s538_s2 + $0x20] sm:$0xff] }
   0x5   :  { %312 = vmatprep.subr.bf16.mxu0 %v385_v3  ;;  %v23_v17 = vld [vmem:[%s537_s1 + $0x38] sm:$0xff]  ;;  %v337_v18 = vpack.c.bf16 %v106_v13, %v105_v12  ;;  %v108_v20 = vld [vmem:[%s538_s2 + $0x28] sm:$0xff] }
   0x6   :  { %335 = vmatpush3.bf16.msra.mxu1 %v334_v15 }
   0x7   :  { %336 = vmatprep.subr.bf16.mxu1 %v385_v3 }
   0x8   :  { %314 = vmatpush3.bf16.msra.mxu0 %v313_v7 }
   0x9   :  { %315 = vmatprep.subr.bf16.mxu0 %v385_v3 }
   0xa   :  { %8 = vsyncpa [#allocation3], 0  ;;  %v319_v21 = vpack.c.bf16 %v23_v17, %v22_v16  ;;  %v24_v22 = vld [vmem:[%s537_s1 + $0x40] sm:$0xff]  ;;  %v25_v23 = vld [vmem:[%s537_s1 + $0x48] sm:$0xff]  ;;  %338 = vmatpush3.bf16.msra.mxu1 %v337_v18  ;;  %v340_v24 = vpack.c.bf16 %v108_v20, %v107_v19  ;;  %s388_s23 = smov [#allocation2]  }
   0xb   :  { %339 = vmatprep.subr.bf16.mxu1 %v385_v3  ;;  %v109_v25 = vld [vmem:[%s538_s2 + $0x30] sm:$0xff]  ;;  %v110_v26 = vld [vmem:[%s538_s2 + $0x38] sm:$0xff]  ;;  %v322_v27 = vpack.c.bf16 %v25_v23, %v24_v22  ;;  %v111_v31 = vld [vmem:[%s538_s2 + $0x40] sm:$0xff] }
   0xc   :  { %317 = vmatpush3.bf16.msra.mxu0 %v316_v14  ;;  %v26_v28 = vld [vmem:[%s537_s1 + $0x50] sm:$0xff]  ;;  %v27_v29 = vld [vmem:[%s537_s1 + $0x58] sm:$0xff]  ;;  %v343_v30 = vpack.c.bf16 %v110_v26, %v109_v25  ;;  %v112_v32 = vld [vmem:[%s538_s2 + $0x48] sm:$0xff] }
   0xd   :  { %318 = vmatprep.subr.bf16.mxu0 %v385_v3  ;;  %v325_v33 = vpack.c.bf16 %v27_v29, %v26_v28  ;;  %v28_v34 = vld [vmem:[%s537_s1 + $0x60] sm:$0xff]  ;;  %v29_v35 = vld [vmem:[%s537_s1 + $0x68] sm:$0xff]  ;;  %v346_v36 = vpack.c.bf16 %v112_v32, %v111_v31  ;;  %v113_v37 = vld [vmem:[%s538_s2 + $0x50] sm:$0xff] }
   0xe   :  { %341 = vmatpush3.bf16.msra.mxu1 %v340_v24  ;;  %v114_v38 = vld [vmem:[%s538_s2 + $0x58] sm:$0xff]  ;;  %v328_v39 = vpack.c.bf16 %v29_v35, %v28_v34  ;;  %v30_v40 = vld [vmem:[%s537_s1 + $0x70] sm:$0xff]  ;;  %v115_v43 = vld [vmem:[%s538_s2 + $0x60] sm:$0xff] }
   0xf   :  { %342 = vmatprep.subr.bf16.mxu1 %v385_v3  ;;  %v31_v41 = vld [vmem:[%s537_s1 + $0x78] sm:$0xff]  ;;  %v349_v42 = vpack.c.bf16 %v114_v38, %v113_v37  ;;  %v116_v44 = vld [vmem:[%s538_s2 + $0x68] sm:$0xff]  ;;  %v15_v47 = vld [vmem:[%s536_s0] sm:$0xff]  ;;  %s197_s0 = sshll.u32 %s388_s23, 4  ;;  %s198_s0 = int_to_ptr.vmem [resolvable:$true] %s197_s0 }
  0x10   :  { %320 = vmatpush3.bf16.msra.mxu0 %v319_v21  ;;  %v331_v45 = vpack.c.bf16 %v31_v41, %v30_v40  ;;  %v352_v46 = vpack.c.bf16 %v116_v44, %v115_v43  ;;  %v117_v48 = vld [vmem:[%s538_s2 + $0x70] sm:$0xff]  ;;  %v118_v49 = vld [vmem:[%s538_s2 + $0x78] sm:$0xff]  ;;  %s361_s24 = scalar_lea.vmem %s198_s0, 128  ;;  %p366_p1 = scmp.lt.s32.totalorder %s198_s0, %s198_s0 }
  0x11   :  { %321 = vmatprep.subr.bf16.mxu0 %v385_v3  ;;  %v355_v50 = vpack.c.bf16 %v118_v49, %v117_v48  ;;  %p362_p0 = scmp.ne.s32.totalorder %s198_s0, %s361_s24  ;;  %p367_p2 = scmp.lt.s32.totalorder %s361_s24, %s361_s24 }
  0x12   :  { %344 = vmatpush3.bf16.msra.mxu1 %v343_v30 }
  0x13   :  { %345 = vmatprep.subr.bf16.mxu1 %v385_v3  ;;  %p368_p3 = por %p367_p2, %p366_p1 }
  0x14   :  { %323 = vmatpush3.bf16.msra.mxu0 %v322_v27 }
  0x15   :  { %324 = vmatprep.subr.bf16.mxu0 %v385_v3  ;;  %p369_p4 = pnand %p368_p3, %p362_p0 }
  0x16   :  { %347 = vmatpush3.bf16.msra.mxu1 %v346_v36 }
  0x17   :  { %348 = vmatprep.subr.bf16.mxu1 %v385_v3 }
  0x18   :  { %326 = vmatpush3.bf16.msra.mxu0 %v325_v33 }
  0x19   :  { %327 = vmatprep.subr.bf16.mxu0 %v385_v3 }
  0x1a   :  { %350 = vmatpush3.bf16.msra.mxu1 %v349_v42 }
  0x1b   :  { %351 = vmatprep.subr.bf16.mxu1 %v385_v3 }
  0x1c   :  { %329 = vmatpush3.bf16.msra.mxu0 %v328_v39 }
  0x1d   :  { %330 = vmatprep.subr.bf16.mxu0 %v385_v3 }
  0x1e   :  { %353 = vmatpush3.bf16.msra.mxu1 %v352_v46 }
  0x1f   :  { %354 = vmatprep.subr.bf16.mxu1 %v385_v3 }
  0x20   :  { %332 = vmatpush3.bf16.msra.mxu0 %v331_v45 }
  0x22   :  { %356 = vmatpush3.bf16.msra.mxu1 %v355_v50 }
  0x23   :  { %272 = vmatmul.mubr.f32.vlgmr.msra.gmra.mrb[0].mxu0 %v15_v47 }
  0xf6   :  { %v98_v51 = vpop.f32.mrb[0].mxu0 }
  0xf7   :  { %v102_v52 = vmax.f32 %v98_v51, 0.0  ;;  %v273_v53 = vpop.f32.mrb[1].mxu0 }
  0xf9   :  { %307 = vmatmul.mubr.f32.vlgmr.msra.gmra.mrb[0].mxu1 %v102_v52 }
 0x1cc   :  { %v185_v54 = vpop.f32.mrb[0].mxu1 }
 0x1cd   :  { %v189_v55 = vmax.f32 %v185_v54, 0.0  ;;  %v308_v56 = vpop.f32.mrb[1].mxu1 }
 0x1cf   :  { %190 = vst [vmem:[#allocation2] sm:$0xff] %v189_v55 }
 0x1d0   :  { %372 = shalt.err (!%p369_p4)
}
 0x1d1   :  { %s373_s26 = scalar_lea.hbm %s539_s3, 128 }
 0x1d2   :  { %p374_p5 = scmp.ne.s32.totalorder %s539_s3, %s373_s26  ;;  %p377_p6 = scmp.lt.u32.totalorder %s373_s26, %s539_s3 }
 0x1d4   :  { %p379_p7 = pnand %p377_p6, %p374_p5 }
 0x1d6   :  { %382 = shalt.err (!%p379_p7)
}
 0x1d7   :  { %200 = dma.vmem_to_hbm [thread:$0]  %s198_s0, 128, %s539_s3, [#allocation3]  }
 0x1d8   :  { %383 = dma.done.wait [#allocation3], 128  }
 0x1d9   :  { %384 = vsyncadd [#allocation3], 4294967168 }
 0x1da   :  { %204 = vsyncpa [#allocation3], 1 }

</bundles_post_ra>
